<compile_context>
chip_gen: v7x
topology: tpu7x:2x2x1
jax: 0.10.0
libtpu: 0.0.40
codegen_flags: <defaults>
</compile_context>

<pallas_src>
import math

import numpy as np
import jax
import jax.numpy as jnp
from jax import lax
from jax.experimental import pallas as pl
from jax.experimental.pallas import tpu as pltpu


_CHUNK = 128                          # rows per in-kernel chunk == output lane width
_TILE_BYTE_BUDGET = 8 * 1024 * 1024   # per x tile; x2 double-buffered = 16 MiB
_VMEM_LIMIT_BYTES = 32 * 1024 * 1024  # safe on v5e/v6e (128 MiB phys) and v7x (64 MiB phys)
_TARGET_GRID_STEPS = 8                # >= 3-4 steps per TensorCore on v7x


def _round_up(x, m):
    return ((x + m - 1) // m) * m


def _nsp_kernel(x_ref, w_ref, b_ref, o_ref):
    # x_ref: [tile_n, H] (VMEM, streamed)     w_ref: [1, H] (VMEM, resident)
    # b_ref: [1, 1]     (SMEM scalar)         o_ref: [tile_n // 128, 128] (lane-dense)
    w = w_ref[...].astype(jnp.float32)        # hoisted: broadcast over rows
    b = b_ref[0, 0]
    n_chunks = o_ref.shape[0]

    def body(c, carry):
        r0 = pl.multiple_of(c * _CHUNK, _CHUNK)
        xc = x_ref[pl.ds(r0, _CHUNK), :].astype(jnp.float32)   # bounded [128, H] f32 temp
        s = jnp.sum(xc * w, axis=-1)                           # VPU mul + XLU lane reduce
        row = (s + b).reshape(1, _CHUNK).astype(o_ref.dtype)   # 128 row-results on lanes
        o_ref[pl.ds(c, 1), :] = row                            # dense (unmasked) store
        return carry

    lax.fori_loop(0, n_chunks, body, 0)


def next_sentence_prediction(x, weight, bias):
    """x: [B, S, H]; weight: [O, H] (PyTorch layout); bias: [O] -> [B, S, O]."""
    B, S, H = x.shape
    O = weight.shape[0]
    assert O == 1, "NextSentencePrediction has len(tag_dic) == 1 output feature"

    N = B * S
    x2d = x.reshape(N, H)
    # Pad rows to a multiple of the 128-row chunk (no-op for typical BERT shapes).
    n_pad = _round_up(N, _CHUNK)
    if n_pad != N:
        x2d = jnp.pad(x2d, ((0, n_pad - N), (0, 0)))
    w2d = weight.reshape(1, H)                      # already lane-dense; no transpose
    b_smem = bias.reshape(1, 1).astype(jnp.float32)

    # ---- tile sizing: VMEM byte budget, but >= _TARGET_GRID_STEPS steps if possible ----
    itemsize = jnp.dtype(x.dtype).itemsize
    sublanes = max(8, 32 // itemsize)               # 8 (f32) / 16 (bf16) / 32 (int8)
    row_quantum = sublanes * _CHUNK                 # keeps the out block's sublane dim packed
    bytes_per_row = H * itemsize
    cap_rows = max(row_quantum,
                   (_TILE_BYTE_BUDGET // bytes_per_row) // row_quantum * row_quantum)
    steps_rows = _round_up(max(1, pl.cdiv(n_pad, _TARGET_GRID_STEPS)), row_quantum)
    tile_n = min(cap_rows, steps_rows)
    if tile_n >= n_pad:
        tile_n = n_pad                              # single tile: blocks == full array dims
    num_tiles = pl.cdiv(n_pad, tile_n)
    chunks_per_tile = tile_n // _CHUNK
    out_rows = num_tiles * chunks_per_tile          # ragged last x tile is clipped/discarded

    cost = pl.CostEstimate(
        flops=2 * n_pad * H,
        transcendentals=0,
        bytes_accessed=n_pad * H * itemsize + H * 4 + out_rows * _CHUNK * itemsize,
    )

    out = pl.pallas_call(
        _nsp_kernel,
        out_shape=jax.ShapeDtypeStruct((out_rows, _CHUNK), x.dtype),
        grid_spec=pltpu.PrefetchScalarGridSpec(
            num_scalar_prefetch=0,
            grid=(num_tiles,),
            in_specs=[
                # streamed activation tiles (double-buffered by Pallas)
                pl.BlockSpec((tile_n, H), lambda i: (i, 0)),
                # weight stays resident across all grid steps (constant index_map)
                pl.BlockSpec((1, H), lambda i: (0, 0)),
                # bias as an SMEM scalar
                pl.BlockSpec(memory_space=pltpu.MemorySpace.SMEM),
            ],
            out_specs=pl.BlockSpec((chunks_per_tile, _CHUNK), lambda i: (i, 0)),
        ),
        compiler_params=pltpu.CompilerParams(
            dimension_semantics=("parallel",),      # independent row tiles -> megacore
            vmem_limit_bytes=_VMEM_LIMIT_BYTES,
        ),
        cost_estimate=cost,
    )(x2d, w2d, b_smem)

    # Flattened row r of the result lives at out[r // 128, r % 128].
    return out.reshape(-1)[:N].reshape(B, S, O)


def init_params(key, hidden, out_features):
    """Deterministic init matching nn.Linear + xavier_normal_ on the weight."""
    kw, kb = jax.random.split(key)
    std = math.sqrt(2.0 / (hidden + out_features))            # xavier normal
    weight = std * jax.random.normal(kw, (out_features, hidden), dtype=jnp.float32)
    bound = 1.0 / math.sqrt(hidden)                           # nn.Linear default bias init
    bias = jax.random.uniform(kb, (out_features,), dtype=jnp.float32,
                              minval=-bound, maxval=bound)
    return weight, bias


def _reference(x, weight, bias):
    xf = np.asarray(x, dtype=np.float64)
    wf = np.asarray(weight, dtype=np.float64)
    bf = np.asarray(bias, dtype=np.float64)
    return xf @ wf.T + bf


if __name__ == "__main__":
    key = jax.random.PRNGKey(0)
    k_x, k_p, k_x2 = jax.random.split(key, 3)

    nsp = jax.jit(next_sentence_prediction)

    # Small shapes implied by the module: [batch, seq, hidden] -> [batch, seq, 1]
    batch, seq, hidden = 2, 8, 32
    out_features = 1  # len(tag_dic) == 1

    x = jax.random.normal(k_x, (batch, seq, hidden), dtype=jnp.float32)
    weight, bias = init_params(k_p, hidden, out_features)

    y = jax.block_until_ready(nsp(x, weight, bias))
    assert y.shape == (batch, seq, out_features)
    assert np.allclose(np.asarray(y, dtype=np.float64), _reference(x, weight, bias),
                       atol=1e-4, rtol=1e-4)

    # Second (still small, ~1 MiB) check exercising the multi-tile / multi-chunk paths.
    b2, s2, h2 = 2, 1024, 128
    x2 = jax.random.normal(k_x2, (b2, s2, h2), dtype=jnp.float32)
    w2, bias2 = init_params(k_p, h2, out_features)
    y2 = jax.block_until_ready(nsp(x2, w2, bias2))
    assert y2.shape == (b2, s2, out_features)
    assert np.allclose(np.asarray(y2, dtype=np.float64), _reference(x2, w2, bias2),
                       atol=1e-4, rtol=1e-4)

    print("KERNEL_OK")
</pallas_src>

<mosaic_0001>
module attributes {stable_mosaic.version = 11 : i64} {
  func.func @_nsp_kernel(%arg0: i32, %arg1: memref<128x32xf32, #tpu.memory_space<vmem>>, %arg2: memref<1x32xf32, #tpu.memory_space<vmem>>, %arg3: memref<1x1xf32, #tpu.memory_space<smem>>, %arg4: memref<1x128xf32, #tpu.memory_space<vmem>>) attributes {dimension_semantics = [#tpu.dimension_semantics<parallel>], iteration_bounds = array<i64: 1>, scalar_prefetch = 0 : i64, scratch_operands = 0 : i64, tpu.core_type = #tpu.core_type<tc>, window_params = [{transform_indices = @transform_0, window_bounds = array<i64: 128, 32>}, {pipeline_mode = #tpu.pipeline_mode<synchronous>, transform_indices = @transform_1, window_bounds = array<i64: 1, 32>}, {transform_indices = @transform_2, window_bounds = array<i64: 1, 1>}, {transform_indices = @transform_3, window_bounds = array<i64: 1, 128>}]} {
    %c0 = arith.constant 0 : index
    %c0_0 = arith.constant 0 : index
    %0 = vector.load %arg2[%c0, %c0_0] : memref<1x32xf32, #tpu.memory_space<vmem>>, vector<1x32xf32>
    %c0_1 = arith.constant 0 : index
    %c0_2 = arith.constant 0 : index
    %1 = memref.load %arg3[%c0_1, %c0_2] : memref<1x1xf32, #tpu.memory_space<smem>>
    %c0_i32 = arith.constant 0 : i32
    %c128_i32 = arith.constant 128 : i32
    %2 = arith.muli %c0_i32, %c128_i32 : i32
    %3 = tpu.assume_multiple %2, 128 : i32
    %4 = arith.index_cast %3 : i32 to index
    %c0_3 = arith.constant 0 : index
    %5 = vector.load %arg1[%4, %c0_3] : memref<128x32xf32, #tpu.memory_space<vmem>>, vector<128x32xf32>
    %6 = vector.broadcast %0 : vector<1x32xf32> to vector<128x32xf32>
    %7 = arith.mulf %5, %6 : vector<128x32xf32>
    %cst = arith.constant dense<0.000000e+00> : vector<128xf32>
    %8 = vector.multi_reduction <add>, %7, %cst [1] : vector<128x32xf32> to vector<128xf32>
    %9 = vector.broadcast %1 : f32 to vector<128xf32>
    %10 = arith.addf %8, %9 : vector<128xf32>
    %11 = vector.shape_cast %10 : vector<128xf32> to vector<1x128xf32>
    %12 = arith.index_cast %c0_i32 : i32 to index
    %c0_4 = arith.constant 0 : index
    %13 = vector.load %arg4[%12, %c0_4] : memref<1x128xf32, #tpu.memory_space<vmem>>, vector<1x128xf32>
    tpu.vector_store %arg4[%12, %c0_4], %11 {strides = array<i32>} : memref<1x128xf32, #tpu.memory_space<vmem>>, vector<1x128xf32>,
    %c1_i32 = arith.constant 1 : i32
    return
  }
  func.func @transform_0(%arg0: i32) -> (i32, i32) {
    %c0_i32 = arith.constant 0 : i32
    %c0_i32_0 = arith.constant 0 : i32
    return %arg0, %c0_i32 : i32, i32
  }
  func.func @transform_1(%arg0: i32) -> (i32, i32) {
    %c0_i32 = arith.constant 0 : i32
    %c0_i32_0 = arith.constant 0 : i32
    %c0_i32_1 = arith.constant 0 : i32
    return %c0_i32, %c0_i32_0 : i32, i32
  }
  func.func @transform_2(%arg0: i32) -> (i32, i32) {
    %c0_i32 = arith.constant 0 : i32
    %c0_i32_0 = arith.constant 0 : i32
    %c0_i32_1 = arith.constant 0 : i32
    return %c0_i32, %c0_i32_0 : i32, i32
  }
  func.func @transform_3(%arg0: i32) -> (i32, i32) {
    %c0_i32 = arith.constant 0 : i32
    %c0_i32_0 = arith.constant 0 : i32
    return %arg0, %c0_i32 : i32, i32
  }
}

</mosaic_0001>

<bundles_post_ra>
// kernel: next_sentence_prediction.1
= control target key start
LH: loop header
LB: loop body
LE: loop exit
PB: predicated region body
PF: predicated region fallthrough
CT: control target
= control target key end

     0   :  { %vm55_vm0 = vcmask 261120   ;;  %v137_v49 = vlaneseq  ;;  %vm148_vm1 = vcmask 130112   ;;  %vm155_vm2 = vcmask 195712   ;;  %s402_s0 = inlined_call_operand.vmem [shape: f32[128,32], index: 0, kind: input, shape index: {}]   ;;  %s403_s1 = inlined_call_operand.vmem [shape: f32[1,32], index: 1, kind: input, shape index: {}]   ;;  %s404_s2 = inlined_call_operand.<no memory space> [shape: f32[1,1], index: 2, kind: input, shape index: {}]   ;;  %s405_s3 = inlined_call_operand.vmem [shape: f32[1,128], index: 3, kind: output, shape index: {}]  }
   0x1   :  { %v254_v0 = vld [vmem:[%s403_s1] ss:$0 sm:$0xff]  ;;  %v19_v2 = vld [vmem:[%s402_s0 + $0x10] sm:$0xff]  ;;  %v18_v5 = vld [vmem:[%s402_s0 + $0x8] sm:$0xff]  ;;  %v351_v54 = vstv %s404_s2  ;;  %vm162_vm3 = vcmask 261312   ;;  %vm169_vm4 = vcmask 326912  }
   0x2   :  { %v17_v1 = vld [vmem:[%s402_s0] sm:$0xff]  ;;  %v41_v4 = vmul.f32 %v254_v0, %v19_v2  ;;  %v20_v6 = vld [vmem:[%s402_s0 + $0x18] sm:$0xff]  ;;  %v40_v7 = vmul.f32 %v254_v0, %v18_v5  ;;  %v22_v10 = vld [vmem:[%s402_s0 + $0x28] sm:$0xff]  ;;  %v342_v50 = vand.u32 127, %v137_v49  ;;  %v344_v51 = vshrl.u32 %v137_v49, 7 }
   0x3   :  { %v39_v3 = vmul.f32 %v254_v0, %v17_v1  ;;  %v42_v8 = vmul.f32 %v254_v0, %v20_v6  ;;  %v21_v9 = vld [vmem:[%s402_s0 + $0x20] sm:$0xff]  ;;  %v44_v16 = vmul.f32 %v254_v0, %v22_v10  ;;  %v23_v17 = vld [vmem:[%s402_s0 + $0x30] sm:$0xff]  ;;  %v24_v18 = vld [vmem:[%s402_s0 + $0x38] sm:$0xff]  ;;  %vm176_vm5 = vcmask 392512  }
   0x4   :  { %v62_v12 = vsel %vm55_vm0, %v41_v4, 0.0  ;;  %v59_v13 = vsel %vm55_vm0, %v40_v7, 0.0  ;;  %v43_v15 = vmul.f32 %v254_v0, %v21_v9  ;;  %v45_v21 = vmul.f32 %v254_v0, %v23_v17  ;;  %v25_v23 = vld [vmem:[%s402_s0 + $0x40] sm:$0xff]  ;;  %v26_v24 = vld [vmem:[%s402_s0 + $0x48] sm:$0xff]  ;;  %v27_v29 = vld [vmem:[%s402_s0 + $0x50] sm:$0xff] }
   0x5   :  { %v56_v11 = vsel %vm55_vm0, %v39_v3, 0.0  ;;  %63 = vadd.xlane.f32.xlu1 %v62_v12  ;;  %v65_v14 = vsel %vm55_vm0, %v42_v8, 0.0  ;;  %v71_v20 = vsel %vm55_vm0, %v44_v16, 0.0  ;;  %v46_v22 = vmul.f32 %v254_v0, %v24_v18  ;;  %v28_v30 = vld [vmem:[%s402_s0 + $0x58] sm:$0xff]  ;;  %v29_v35 = vld [vmem:[%s402_s0 + $0x60] sm:$0xff]  ;;  %v30_v36 = vld [vmem:[%s402_s0 + $0x68] sm:$0xff] }
   0x6   :  { %57 = vadd.xlane.f32.xlu0 %v56_v11  ;;  %v68_v19 = vsel %vm55_vm0, %v43_v15, 0.0  ;;  %v74_v25 = vsel %vm55_vm0, %v45_v21, 0.0  ;;  %v47_v27 = vmul.f32 %v254_v0, %v25_v23  ;;  %v48_v28 = vmul.f32 %v254_v0, %v26_v24  ;;  %v31_v41 = vld [vmem:[%s402_s0 + $0x70] sm:$0xff]  ;;  %v32_v42 = vld [vmem:[%s402_s0 + $0x78] sm:$0xff] }
   0x7   :  { %v77_v26 = vsel %vm55_vm0, %v46_v22, 0.0  ;;  %v49_v33 = vmul.f32 %v254_v0, %v27_v29  ;;  %v50_v34 = vmul.f32 %v254_v0, %v28_v30  ;;  %v51_v39 = vmul.f32 %v254_v0, %v29_v35 }
   0x8   :  { %v80_v31 = vsel %vm55_vm0, %v47_v27, 0.0  ;;  %v83_v32 = vsel %vm55_vm0, %v48_v28, 0.0  ;;  %v52_v40 = vmul.f32 %v254_v0, %v30_v36  ;;  %v53_v45 = vmul.f32 %v254_v0, %v31_v41 }
   0x9   :  { %66 = vadd.xlane.f32.xlu1 %v65_v14  ;;  %v86_v37 = vsel %vm55_vm0, %v49_v33, 0.0  ;;  %v89_v38 = vsel %vm55_vm0, %v50_v34, 0.0  ;;  %v92_v43 = vsel %vm55_vm0, %v51_v39, 0.0  ;;  %v54_v46 = vmul.f32 %v254_v0, %v32_v42 }
   0xa   :  { %60 = vadd.xlane.f32.xlu0 %v59_v13  ;;  %v95_v44 = vsel %vm55_vm0, %v52_v40, 0.0  ;;  %v98_v47 = vsel %vm55_vm0, %v53_v45, 0.0  ;;  %v143_v52 = vadd.s32 4294967288, %v342_v50  ;;  %v157_v53 = vadd.s32 4294967272, %v342_v50 }
   0xb   :  { %v101_v48 = vsel %vm55_vm0, %v54_v46, 0.0  ;;  %v150_v56 = vadd.s32 4294967280, %v342_v50  ;;  %v164_v58 = vadd.s32 4294967264, %v342_v50  ;;  %v141_v59 = vsub.s32 %v342_v50, %v344_v51 }
   0xc   :  { %v146_v61 = vsub.s32 %v143_v52, %v344_v51  ;;  %v160_v62 = vsub.s32 %v157_v53, %v344_v51  ;;  %v171_v3 = vadd.s32 4294967256, %v342_v50  ;;  %v178_v10 = vadd.s32 4294967248, %v342_v50 }
   0xd   :  { %72 = vadd.xlane.f32.xlu1 %v71_v20  ;;  %v153_v63 = vsub.s32 %v150_v56, %v344_v51  ;;  %v167_v6 = vsub.s32 %v164_v58, %v344_v51  ;;  %v185_v15 = vadd.s32 4294967240, %v342_v50  ;;  %v192_v23 = vadd.s32 4294967232, %v342_v50 }
   0xe   :  { %69 = vadd.xlane.f32.xlu0 %v68_v19  ;;  %v174_v13 = vsub.s32 %v171_v3, %v344_v51  ;;  %v181_v22 = vsub.s32 %v178_v10, %v344_v51  ;;  %v199_v28 = vadd.s32 4294967224, %v342_v50  ;;  %vm183_vm6 = vcmask 458112  }
   0xf   :  { %v195_v33 = vsub.s32 %v192_v23, %v344_v51  ;;  %v206_v34 = vadd.s32 4294967216, %v342_v50  ;;  %v213_v40 = vadd.s32 4294967208, %v342_v50  ;;  %vm190_vm7 = vcmask 523712  }
  0x10   :  { %vm197_vm8 = vcmask 589312   ;;  %v220_v46 = vadd.s32 4294967200, %v342_v50  ;;  %vm204_vm9 = vcmask 654912   ;;  %vm211_vm10 = vcmask 720512  }
  0x11   :  { %78 = vadd.xlane.f32.xlu1 %v77_v26  ;;  %v188_v26 = vsub.s32 %v185_v15, %v344_v51  ;;  %v209_v45 = vsub.s32 %v206_v34, %v344_v51  ;;  %v216_v52 = vsub.s32 %v213_v40, %v344_v51  ;;  %vm218_vm11 = vcmask 786112  }
  0x12   :  { %75 = vadd.xlane.f32.xlu0 %v74_v25  ;;  %vm225_vm12 = vcmask 851712   ;;  %vm232_vm13 = vcmask 917312   ;;  %vm239_vm14 = vcmask 982912   ;;  %vm246_vm15 = vcmask 1048512  }
  0x15   :  { %84 = vadd.xlane.f32.xlu1 %v83_v32 }
  0x16   :  { %81 = vadd.xlane.f32.xlu0 %v80_v31 }
  0x19   :  { %90 = vadd.xlane.f32.xlu1 %v89_v38  ;;  %v202_v38 = vsub.s32 %v199_v28, %v344_v51 }
  0x1a   :  { %87 = vadd.xlane.f32.xlu0 %v86_v37 }
  0x1d   :  { %96 = vadd.xlane.f32.xlu1 %v95_v44 }
  0x1e   :  { %93 = vadd.xlane.f32.xlu0 %v92_v43 }
  0x21   :  { %102 = vadd.xlane.f32.xlu1 %v101_v48 }
  0x22   :  { %99 = vadd.xlane.f32.xlu0 %v98_v47 }
  0x92   :  { %v64_v57 = vpop.xlane.xlu1 %63 }
  0x93   :  { %v58_v55 = vpop.xlane.xlu0 %57  ;;  %v107_v0 = vadd.f32 %v351_v54, %v64_v57 }
  0x94   :  { %v105_v60 = vadd.f32 %v351_v54, %v58_v55  ;;  %v227_v55 = vadd.s32 4294967192, %v342_v50 }
  0x95   :  { %v154_v11 = vrot.slane %v107_v0, %v153_v63 }
  0x96   :  { %v67_v2 = vpop.xlane.xlu1 %66  ;;  %v142_v7 = vrot.slane %v105_v60, %v141_v59  ;;  %v223_v60 = vsub.s32 %v220_v46, %v344_v51 }
  0x97   :  { %v61_v1 = vpop.xlane.xlu0 %60  ;;  %v108_v5 = vadd.f32 %v351_v54, %v67_v2  ;;  %v230_v2 = vsub.s32 %v227_v55, %v344_v51 }
  0x98   :  { %v106_v4 = vadd.f32 %v351_v54, %v61_v1 }
  0x99   :  { %v161_v9 = vrot.slane %v108_v5, %v160_v62  ;;  %v241_v62 = vadd.s32 4294967176, %v342_v50 }
  0x9a   :  { %v147_v8 = vrot.slane %v106_v4, %v146_v61  ;;  %v73_v14 = vpop.xlane.xlu1 %72  ;;  %v234_v61 = vadd.s32 4294967184, %v342_v50 }
  0x9b   :  { %v70_v12 = vpop.xlane.xlu0 %69  ;;  %v110_v18 = vadd.f32 %v351_v54, %v73_v14 }
  0x9c   :  { %v149_v16 = vsel %vm148_vm1, %v147_v8, %v142_v7  ;;  %v109_v17 = vadd.f32 %v351_v54, %v70_v12  ;;  %v237_v8 = vsub.s32 %v234_v61, %v344_v51 }
  0x9d   :  { %v156_v19 = vsel %vm155_vm2, %v154_v11, %v149_v16  ;;  %v175_v24 = vrot.slane %v110_v18, %v174_v13 }
  0x9e   :  { %v163_v20 = vsel %vm162_vm3, %v161_v9, %v156_v19  ;;  %v168_v21 = vrot.slane %v109_v17, %v167_v6  ;;  %v79_v27 = vpop.xlane.xlu1 %78  ;;  %v244_v9 = vsub.s32 %v241_v62, %v344_v51 }
  0x9f   :  { %v76_v25 = vpop.xlane.xlu0 %75  ;;  %v112_v31 = vadd.f32 %v351_v54, %v79_v27 }
  0xa0   :  { %v170_v29 = vsel %vm169_vm4, %v168_v21, %v163_v20  ;;  %v111_v30 = vadd.f32 %v351_v54, %v76_v25 }
  0xa1   :  { %v177_v35 = vsel %vm176_vm5, %v175_v24, %v170_v29  ;;  %v189_v36 = vrot.slane %v112_v31, %v188_v26 }
  0xa2   :  { %v182_v32 = vrot.slane %v111_v30, %v181_v22  ;;  %v85_v39 = vpop.xlane.xlu1 %84 }
  0xa3   :  { %v82_v37 = vpop.xlane.xlu0 %81  ;;  %v114_v43 = vadd.f32 %v351_v54, %v85_v39 }
  0xa4   :  { %v184_v41 = vsel %vm183_vm6, %v182_v32, %v177_v35  ;;  %v113_v42 = vadd.f32 %v351_v54, %v82_v37 }
  0xa5   :  { %v191_v47 = vsel %vm190_vm7, %v189_v36, %v184_v41  ;;  %v203_v48 = vrot.slane %v114_v43, %v202_v38 }
  0xa6   :  { %v196_v44 = vrot.slane %v113_v42, %v195_v33  ;;  %v91_v53 = vpop.xlane.xlu1 %90 }
  0xa7   :  { %v88_v49 = vpop.xlane.xlu0 %87  ;;  %v116_v58 = vadd.f32 %v351_v54, %v91_v53 }
  0xa8   :  { %v198_v56 = vsel %vm197_vm8, %v196_v44, %v191_v47  ;;  %v115_v57 = vadd.f32 %v351_v54, %v88_v49 }
  0xa9   :  { %v205_v63 = vsel %vm204_vm9, %v203_v48, %v198_v56  ;;  %v217_v0 = vrot.slane %v116_v58, %v216_v52 }
  0xaa   :  { %v210_v59 = vrot.slane %v115_v57, %v209_v45  ;;  %v97_v3 = vpop.xlane.xlu1 %96 }
  0xab   :  { %v94_v1 = vpop.xlane.xlu0 %93  ;;  %v118_v6 = vadd.f32 %v351_v54, %v97_v3 }
  0xac   :  { %v212_v4 = vsel %vm211_vm10, %v210_v59, %v205_v63  ;;  %v117_v5 = vadd.f32 %v351_v54, %v94_v1 }
  0xad   :  { %v219_v10 = vsel %vm218_vm11, %v217_v0, %v212_v4  ;;  %v231_v50 = vrot.slane %v118_v6, %v230_v2 }
  0xae   :  { %v224_v7 = vrot.slane %v117_v5, %v223_v60  ;;  %v103_v12 = vpop.xlane.xlu1 %102 }
  0xaf   :  { %v100_v11 = vpop.xlane.xlu0 %99  ;;  %v120_v15 = vadd.f32 %v351_v54, %v103_v12 }
  0xb0   :  { %v226_v13 = vsel %vm225_vm12, %v224_v7, %v219_v10  ;;  %v119_v14 = vadd.f32 %v351_v54, %v100_v11 }
  0xb1   :  { %v245_v17 = vrot.slane %v120_v15, %v244_v9  ;;  %v233_v18 = vsel %vm232_vm13, %v231_v50, %v226_v13 }
  0xb2   :  { %v238_v16 = vrot.slane %v119_v14, %v237_v8 }
  0xb4   :  { %v240_v19 = vsel %vm239_vm14, %v238_v16, %v233_v18 }
  0xb5   :  { %v247_v20 = vsel %vm246_vm15, %v245_v17, %v240_v19 }
  0xb6   :  { %249 = vst [vmem:[%s405_s3] sm:$0x1] %v247_v20 }

</bundles_post_ra>
